<compile_context>
chip_gen: v6e
topology: v6e:2x2x1
jax: 0.10.0
libtpu: 0.0.40
codegen_flags: <defaults>
</compile_context>

<pallas_src>
import functools

import jax
import jax.numpy as jnp
import numpy as np
from jax import lax
from jax.experimental import pallas as pl
from jax.experimental.pallas import tpu as pltpu


def _silhouette_kernel(return_loss, delta, num_classes,
                       xsup_ref, xq_ref, ysup_ref, yq_ref, out_ref):
    # One few-shot episode per grid step. Embeddings stay in their input dtype
    # for the MXU; all element-wise math in f32 (v5e has no bf16 VPU/EUP).
    xs = xsup_ref[...]                            # (N, D)
    xq = xq_ref[...]                              # (N, D)
    ysup = ysup_ref[...]                          # (N, 1) int32
    yq = yq_ref[...]                              # (N, 1) int32

    n = xs.shape[0]
    inf = jnp.float32(jnp.inf)
    one = jnp.float32(1.0)

    xs32 = xs.astype(jnp.float32)
    xq32 = xq.astype(jnp.float32)

    # --- pairwise Euclidean distances dist[q, s] = ||xq[q] - xs[s]|| (MXU) ----
    # NOTE: expanded form can lose ~1e-3 abs precision for near-duplicate rows
    # vs. an element-wise cdist; acceptable at the module's tolerance.
    cross = lax.dot_general(xq, xs, (((1,), (1,)), ((), ())),
                            preferred_element_type=jnp.float32)          # (N, N)
    q2 = jnp.sum(xq32 * xq32, axis=1, keepdims=True)                     # (N, 1)
    s2_row = jnp.transpose(jnp.sum(xs32 * xs32, axis=1, keepdims=True))  # (1, N)
    dist = jnp.sqrt(jnp.maximum(q2 + s2_row - 2.0 * cross, 0.0))         # (N, N)

    # --- (N, C) one-hot class memberships ------------------------------------
    class_row = lax.broadcasted_iota(jnp.int32, (1, num_classes), 1)     # (1, C)
    onehot_sup = (ysup == class_row).astype(jnp.float32)                 # (N, C)
    onehot_q = (yq == class_row).astype(jnp.float32)                     # (N, C)

    cnt_sup = jnp.sum(onehot_sup, axis=0, keepdims=True)                 # (1, C)
    cnt_q = jnp.sum(onehot_q, axis=0, keepdims=True)                     # (1, C)
    class_valid = cnt_sup > 0.0        # class actually present among supports
    class_has_q = cnt_q > 0.0          # class has at least one query

    # --- query-side class means: mq[q, c] = mean_{s in class c} dist[q, s] ---
    mq_sum = jnp.dot(dist, onehot_sup, preferred_element_type=jnp.float32)  # (N, C)
    mq = mq_sum / jnp.maximum(cnt_sup, one)                                 # (N, C)

    # intra[j]: mean distance from query j to the supports of its own class.
    intra_sum = jnp.sum(mq_sum * onehot_q, axis=1, keepdims=True)        # (N, 1)
    cnt_intra = jnp.sum(cnt_sup * onehot_q, axis=1, keepdims=True)       # (N, 1)
    has_q = cnt_intra > 0.0            # query j's class is a support class
    intra = jnp.where(has_q, intra_sum / jnp.maximum(cnt_intra, one), 0.0)

    # --- support-side class means: ms[s, c] = mean_{q in class c} dist[q, s] --
    # Contract over dim 0 of the *small* one-hot so dist is never transposed.
    ms_sum_t = lax.dot_general(onehot_q, dist, (((0,), (0,)), ((), ())),
                               preferred_element_type=jnp.float32)       # (C, N)
    ms = jnp.transpose(ms_sum_t) / jnp.maximum(cnt_q, one)               # (N, C)

    # --- inter[j]: reference's running min over class pairs (a < b) ----------
    # Support path: j as support of class a = ysup[j]; candidates are means
    # over queries of every support class b > a. A class b with zero queries
    # poisons j with NaN in the reference (-> nan_to_num -> 0).
    sup_mask = class_valid & (class_row > ysup)                          # (N, C)
    cand_a = jnp.min(jnp.where(sup_mask & class_has_q, ms, inf),
                     axis=1, keepdims=True)                              # (N, 1)
    poisoned = jnp.sum(jnp.where(sup_mask & (~class_has_q), 1.0, 0.0),
                       axis=1, keepdims=True) > 0.0                      # (N, 1)

    # Query path: j as query of class b = yq[j] (only if b is a support class);
    # candidates are means over supports of every support class a < b.
    q_mask = class_valid & (class_row < yq)                              # (N, C)
    cand_b = jnp.where(has_q,
                       jnp.min(jnp.where(q_mask, mq, inf), axis=1, keepdims=True),
                       inf)

    inter = jnp.minimum(cand_a, cand_b)                                  # (N, 1)

    # --- silhouette samples, nan_to_num, mean, optional loss -----------------
    ok = (~poisoned) & (inter < inf)     # NaN / inf samples -> 0 in the reference
    inter_safe = jnp.where(ok, inter, 0.0)
    sil = (inter_safe - intra) / jnp.maximum(jnp.maximum(intra, inter_safe),
                                             jnp.float32(delta))
    score = jnp.sum(jnp.where(ok, sil, 0.0)) / jnp.float32(n)
    result = (1.0 - score) * 0.5 if return_loss else score
    out_ref[...] = jnp.reshape(result, (1, 1))


def _vmem_limit_bytes(n, d, c, itemsize):
    try:
        phys = int(pltpu.get_tpu_info().vmem_capacity_bytes)
    except Exception:
        phys = 64 * 1024 * 1024            # conservative: v7x per-TC VMEM
    cap = (phys // 8) * 7                  # leave Mosaic-internal scratch headroom
    # double-buffered per-episode inputs + f32 body temporaries (dist, cross, means)
    need = (2 * 2 * (2 * n * d * itemsize + 2 * n * 4)
            + 4 * n * n * 4 + 10 * n * c * 4 + (1 << 20))
    if need > cap:
        # TODO(synk): for very large N switch to a support-axis grid reduction
        # instead of the untiled per-episode body.
        raise ValueError(
            f"per-episode VMEM working set (~{need} B) exceeds cap ({cap} B)")
    return int(min(max(2 * need, 32 * 1024 * 1024), cap))


def silhouette_distance_fs_batched(support_embeddings, support_labels,
                                   query_embeddings, query_labels, *,
                                   num_classes, return_loss=True, delta=1e-4):
    """Scores a batch of episodes: embeddings (E, N, D), labels (E, N) -> (E,)."""
    xs = jnp.asarray(support_embeddings)
    xq = jnp.asarray(query_embeddings)
    if xs.ndim != 3 or xq.ndim != 3:
        raise ValueError("batched inputs must have shape (E, N, D)")
    e, ns, d = xs.shape
    eq, nq, dq = xq.shape
    assert e == eq and d == dq
    # Reference quirk: the query-sized inter_dist is indexed with support-label
    # masks, which only works when N_support == N_query.
    assert ns == nq, "SilhouetteDistanceFS requires N_support == N_query"
    n = ns
    num_classes = int(num_classes)
    assert num_classes >= 1

    emb_dtype = jnp.promote_types(xs.dtype, xq.dtype)
    if not jnp.issubdtype(emb_dtype, jnp.floating):
        emb_dtype = jnp.float32
    xs = xs.astype(emb_dtype)
    xq = xq.astype(emb_dtype)
    ysup = jnp.asarray(support_labels).astype(jnp.int32).reshape(e, n, 1)
    yq = jnp.asarray(query_labels).astype(jnp.int32).reshape(e, n, 1)

    itemsize = jnp.dtype(emb_dtype).itemsize
    vmem_limit = _vmem_limit_bytes(n, d, num_classes, itemsize)

    cost = pl.CostEstimate(
        flops=int(e * (2 * n * n * d + 4 * n * n * num_classes + 12 * n * n)),
        transcendentals=int(e * n * n),
        bytes_accessed=int(e * (2 * n * d * itemsize + 2 * n * 4 + 4)),
    )

    kernel = functools.partial(_silhouette_kernel, bool(return_loss),
                               float(delta), num_classes)
    out = pl.pallas_call(
        kernel,
        grid=(e,),
        out_shape=jax.ShapeDtypeStruct((e, 1, 1), jnp.float32),
        in_specs=[
            pl.BlockSpec((None, n, d), lambda i: (i, 0, 0)),
            pl.BlockSpec((None, n, d), lambda i: (i, 0, 0)),
            pl.BlockSpec((None, n, 1), lambda i: (i, 0, 0)),
            pl.BlockSpec((None, n, 1), lambda i: (i, 0, 0)),
        ],
        out_specs=pl.BlockSpec((None, 1, 1), lambda i: (i, 0, 0)),
        compiler_params=pltpu.CompilerParams(
            dimension_semantics=("parallel",),      # megacore sharding on v7x
            vmem_limit_bytes=vmem_limit),
        cost_estimate=cost,
    )(xs, xq, ysup, yq)
    return out.reshape(e)


def silhouette_distance_fs(support_embeddings, support_labels,
                           query_embeddings, query_labels, *,
                           num_classes, return_loss=True, delta=1e-4):
    """Single-episode API matching the torch module's forward()."""
    out = silhouette_distance_fs_batched(
        jnp.asarray(support_embeddings)[None], jnp.asarray(support_labels)[None],
        jnp.asarray(query_embeddings)[None], jnp.asarray(query_labels)[None],
        num_classes=num_classes, return_loss=return_loss, delta=delta)
    # TODO(synk): return_loss=False in torch calls .item(); a traced scalar is
    # returned here instead of a host-synced Python float.
    return out[0]


def _reference_numpy(xs, ys, xq, yq, delta=1e-4, return_loss=True):
    """Direct NumPy port of the PyTorch reference (loops + boolean masks)."""
    xs = np.asarray(xs, np.float32)
    xq = np.asarray(xq, np.float32)
    ys = np.asarray(ys)
    yq = np.asarray(yq)
    uniq = np.unique(ys)
    n_q = yq.shape[0]
    A = np.zeros(n_q, np.float64)
    B = np.full(n_q, np.inf, np.float64)

    def cdist(a, b):
        return np.sqrt(((a[:, None, :] - b[None, :, :]) ** 2).sum(-1))

    for i, la in enumerate(uniq):
        ma_s = ys == la
        ma_q = yq == la
        if ma_q.any():
            A[ma_q] = cdist(xs[ma_s], xq[ma_q]).mean(axis=0)
        for lb in uniq[i + 1:]:
            mb_q = yq == lb
            d_ab = cdist(xs[ma_s], xq[mb_q])
            d_ba = cdist(xq[mb_q], xs[ma_s])
            with np.errstate(invalid="ignore"):
                B[ma_s] = np.minimum(d_ab.mean(axis=1) if d_ab.shape[1] else np.nan,
                                     B[ma_s])
                if mb_q.any():
                    B[mb_q] = np.minimum(d_ba.mean(axis=1), B[mb_q])
    with np.errstate(invalid="ignore"):
        sil = (B - A) / np.clip(np.maximum(A, B), delta, None)
    sil = np.nan_to_num(sil)
    m = sil.mean()
    return float((1 - m) / 2) if return_loss else float(m)


if __name__ == "__main__":
    key = jax.random.PRNGKey(0)
    keys = jax.random.split(key, 10)

    # --- case 1: batched episodes (E=2), 4-way few-shot, N=16, D=32 ----------
    E, N, D, C = 2, 16, 32, 4
    xs_b = jax.random.normal(keys[0], (E, N, D), jnp.float32)
    xq_b = jax.random.normal(keys[1], (E, N, D), jnp.float32)
    ys_b = jnp.stack([jax.random.permutation(keys[2], jnp.arange(N, dtype=jnp.int32) % C),
                      jax.random.permutation(keys[3], jnp.arange(N, dtype=jnp.int32) % C)])
    yq_b = jnp.stack([jax.random.permutation(keys[4], jnp.arange(N, dtype=jnp.int32) % C),
                      jax.random.permutation(keys[5], jnp.arange(N, dtype=jnp.int32) % C)])

    fn_b = jax.jit(functools.partial(silhouette_distance_fs_batched, num_classes=C))
    loss_b = jax.block_until_ready(fn_b(xs_b, ys_b, xq_b, yq_b))
    for ep in range(E):
        ref = _reference_numpy(xs_b[ep], ys_b[ep], xq_b[ep], yq_b[ep])
        np.testing.assert_allclose(float(loss_b[ep]), ref, rtol=2e-3, atol=2e-3)

    # --- case 2: single episode, awkward sizes + a support class w/o queries --
    N2, D2, C2 = 40, 48, 5
    xs2 = jax.random.normal(keys[6], (N2, D2), jnp.float32)
    xq2 = jax.random.normal(keys[7], (N2, D2), jnp.float32)
    ys2 = jnp.tile(jnp.arange(C2, dtype=jnp.int32), N2 // C2)          # all classes
    yq2 = jax.random.randint(keys[8], (N2,), 0, C2 - 1, dtype=jnp.int32)  # class 4 empty

    fn_s = jax.jit(functools.partial(silhouette_distance_fs, num_classes=C2))
    loss2 = jax.block_until_ready(fn_s(xs2, ys2, xq2, yq2))
    ref2 = _reference_numpy(xs2, ys2, xq2, yq2)
    np.testing.assert_allclose(float(loss2), ref2, rtol=2e-3, atol=2e-3)

    print("KERNEL_OK")
</pallas_src>

<mosaic_0001>
module attributes {stable_mosaic.version = 11 : i64} {
  func.func @_silhouette_kernel(%arg0: i32, %arg1: memref<1x16x32xf32, #tpu.memory_space<vmem>>, %arg2: memref<1x16x32xf32, #tpu.memory_space<vmem>>, %arg3: memref<1x16x1xi32, #tpu.memory_space<vmem>>, %arg4: memref<1x16x1xi32, #tpu.memory_space<vmem>>, %arg5: memref<1x1x1xf32, #tpu.memory_space<vmem>>) attributes {dimension_semantics = [#tpu.dimension_semantics<parallel>], iteration_bounds = array<i64: 2>, scalar_prefetch = 0 : i64, scratch_operands = 0 : i64, tpu.core_type = #tpu.core_type<tc>, window_params = [{transform_indices = @transform_0, window_bounds = array<i64: 1, 16, 32>}, {transform_indices = @transform_1, window_bounds = array<i64: 1, 16, 32>}, {transform_indices = @transform_2, window_bounds = array<i64: 1, 16, 1>}, {transform_indices = @transform_3, window_bounds = array<i64: 1, 16, 1>}, {transform_indices = @transform_4, window_bounds = array<i64: 1, 1, 1>}]} {
    %c0 = arith.constant 0 : index
    %c0_0 = arith.constant 0 : index
    %c0_1 = arith.constant 0 : index
    %0 = vector.load %arg1[%c0, %c0_0, %c0_1] : memref<1x16x32xf32, #tpu.memory_space<vmem>>, vector<1x16x32xf32>
    %1 = vector.shape_cast %0 : vector<1x16x32xf32> to vector<16x32xf32>
    %c0_2 = arith.constant 0 : index
    %c0_3 = arith.constant 0 : index
    %c0_4 = arith.constant 0 : index
    %2 = vector.load %arg2[%c0_2, %c0_3, %c0_4] : memref<1x16x32xf32, #tpu.memory_space<vmem>>, vector<1x16x32xf32>
    %3 = vector.shape_cast %2 : vector<1x16x32xf32> to vector<16x32xf32>
    %c0_5 = arith.constant 0 : index
    %c0_6 = arith.constant 0 : index
    %c0_7 = arith.constant 0 : index
    %4 = vector.load %arg3[%c0_5, %c0_6, %c0_7] : memref<1x16x1xi32, #tpu.memory_space<vmem>>, vector<1x16x1xi32>
    %5 = vector.shape_cast %4 : vector<1x16x1xi32> to vector<16x1xi32>
    %c0_8 = arith.constant 0 : index
    %c0_9 = arith.constant 0 : index
    %c0_10 = arith.constant 0 : index
    %6 = vector.load %arg4[%c0_8, %c0_9, %c0_10] : memref<1x16x1xi32, #tpu.memory_space<vmem>>, vector<1x16x1xi32>
    %7 = vector.shape_cast %6 : vector<1x16x1xi32> to vector<16x1xi32>
    %cst = arith.constant dense<0.000000e+00> : vector<16x16xf32>
    %8 = tpu.matmul %3, %1, %cst {dimension_numbers = #tpu.dot_dimension_numbers<[1], [1], [0], [0], [0, 0, 1, 0], [], []>} : vector<16x32xf32>, vector<16x32xf32>, vector<16x16xf32> -> vector<16x16xf32>
    %9 = arith.mulf %3, %3 : vector<16x32xf32>
    %cst_11 = arith.constant dense<0.000000e+00> : vector<16xf32>
    %10 = vector.multi_reduction <add>, %9, %cst_11 [1] : vector<16x32xf32> to vector<16xf32>
    %11 = vector.shape_cast %10 : vector<16xf32> to vector<16x1xf32>
    %12 = arith.mulf %1, %1 : vector<16x32xf32>
    %cst_12 = arith.constant dense<0.000000e+00> : vector<16xf32>
    %13 = vector.multi_reduction <add>, %12, %cst_12 [1] : vector<16x32xf32> to vector<16xf32>
    %14 = vector.shape_cast %13 : vector<16xf32> to vector<16x1xf32>
    %15 = tpu.transpose %14, [1, 0] : vector<16x1xf32> -> vector<1x16xf32>
    %16 = vector.broadcast %11 : vector<16x1xf32> to vector<16x16xf32>
    %17 = vector.broadcast %15 : vector<1x16xf32> to vector<16x16xf32>
    %18 = arith.addf %16, %17 : vector<16x16xf32>
    %cst_13 = arith.constant 2.000000e+00 : f32
    %19 = vector.broadcast %cst_13 : f32 to vector<16x16xf32>
    %20 = arith.mulf %19, %8 : vector<16x16xf32>
    %21 = arith.subf %18, %20 : vector<16x16xf32>
    %cst_14 = arith.constant 0.000000e+00 : f32
    %22 = vector.broadcast %cst_14 : f32 to vector<16x16xf32>
    %23 = arith.maximumf %21, %22 : vector<16x16xf32>
    %24 = math.sqrt %23 : vector<16x16xf32>
    %25 = tpu.iota {dimensions = array<i32: 1>} : vector<1x4xi32>
    %26 = vector.broadcast %5 : vector<16x1xi32> to vector<16x4xi32>
    %27 = vector.broadcast %25 : vector<1x4xi32> to vector<16x4xi32>
    %28 = arith.cmpi eq, %26, %27 : vector<16x4xi32>
    %29 = arith.extui %28 : vector<16x4xi1> to vector<16x4xi32>
    %30 = arith.sitofp %29 : vector<16x4xi32> to vector<16x4xf32>
    %31 = vector.broadcast %7 : vector<16x1xi32> to vector<16x4xi32>
    %32 = vector.broadcast %25 : vector<1x4xi32> to vector<16x4xi32>
    %33 = arith.cmpi eq, %31, %32 : vector<16x4xi32>
    %34 = arith.extui %33 : vector<16x4xi1> to vector<16x4xi32>
    %35 = arith.sitofp %34 : vector<16x4xi32> to vector<16x4xf32>
    %cst_15 = arith.constant dense<0.000000e+00> : vector<4xf32>
    %36 = vector.multi_reduction <add>, %30, %cst_15 [0] : vector<16x4xf32> to vector<4xf32>
    %37 = vector.shape_cast %36 : vector<4xf32> to vector<1x4xf32>
    %cst_16 = arith.constant dense<0.000000e+00> : vector<4xf32>
    %38 = vector.multi_reduction <add>, %35, %cst_16 [0] : vector<16x4xf32> to vector<4xf32>
    %39 = vector.shape_cast %38 : vector<4xf32> to vector<1x4xf32>
    %cst_17 = arith.constant 0.000000e+00 : f32
    %40 = vector.broadcast %cst_17 : f32 to vector<1x4xf32>
    %41 = arith.cmpf ogt, %37, %40 : vector<1x4xf32>
    %cst_18 = arith.constant 0.000000e+00 : f32
    %42 = vector.broadcast %cst_18 : f32 to vector<1x4xf32>
    %43 = arith.cmpf ogt, %39, %42 : vector<1x4xf32>
    %cst_19 = arith.constant dense<0.000000e+00> : vector<16x4xf32>
    %44 = tpu.matmul %24, %30, %cst_19 {dimension_numbers = #tpu.dot_dimension_numbers<[1], [0], [0], [1], [0, 0, 1, 1], [], []>} : vector<16x16xf32>, vector<16x4xf32>, vector<16x4xf32> -> vector<16x4xf32>
    %cst_20 = arith.constant 1.000000e+00 : f32
    %45 = vector.broadcast %cst_20 : f32 to vector<1x4xf32>
    %46 = arith.maximumf %37, %45 : vector<1x4xf32>
    %47 = vector.broadcast %46 : vector<1x4xf32> to vector<16x4xf32>
    %48 = arith.divf %44, %47 : vector<16x4xf32>
    %49 = arith.mulf %44, %35 : vector<16x4xf32>
    %cst_21 = arith.constant dense<0.000000e+00> : vector<16xf32>
    %50 = vector.multi_reduction <add>, %49, %cst_21 [1] : vector<16x4xf32> to vector<16xf32>
    %51 = vector.shape_cast %50 : vector<16xf32> to vector<16x1xf32>
    %52 = vector.broadcast %37 : vector<1x4xf32> to vector<16x4xf32>
    %53 = arith.mulf %52, %35 : vector<16x4xf32>
    %cst_22 = arith.constant dense<0.000000e+00> : vector<16xf32>
    %54 = vector.multi_reduction <add>, %53, %cst_22 [1] : vector<16x4xf32> to vector<16xf32>
    %55 = vector.shape_cast %54 : vector<16xf32> to vector<16x1xf32>
    %cst_23 = arith.constant 0.000000e+00 : f32
    %56 = vector.broadcast %cst_23 : f32 to vector<16x1xf32>
    %57 = arith.cmpf ogt, %55, %56 : vector<16x1xf32>
    %cst_24 = arith.constant 1.000000e+00 : f32
    %58 = vector.broadcast %cst_24 : f32 to vector<16x1xf32>
    %59 = arith.maximumf %55, %58 : vector<16x1xf32>
    %60 = arith.divf %51, %59 : vector<16x1xf32>
    %cst_25 = arith.constant 0.000000e+00 : f32
    %61 = vector.broadcast %cst_25 : f32 to vector<16x1xf32>
    %62 = arith.select %57, %60, %61 : vector<16x1xi1>, vector<16x1xf32>
    %cst_26 = arith.constant dense<0.000000e+00> : vector<4x16xf32>
    %63 = tpu.matmul %35, %24, %cst_26 {dimension_numbers = #tpu.dot_dimension_numbers<[0], [0], [1], [1], [0, 1, 1, 1], [], []>} : vector<16x4xf32>, vector<16x16xf32>, vector<4x16xf32> -> vector<4x16xf32>
    %64 = tpu.transpose %63, [1, 0] : vector<4x16xf32> -> vector<16x4xf32>
    %cst_27 = arith.constant 1.000000e+00 : f32
    %65 = vector.broadcast %cst_27 : f32 to vector<1x4xf32>
    %66 = arith.maximumf %39, %65 : vector<1x4xf32>
    %67 = vector.broadcast %66 : vector<1x4xf32> to vector<16x4xf32>
    %68 = arith.divf %64, %67 : vector<16x4xf32>
    %69 = vector.broadcast %25 : vector<1x4xi32> to vector<16x4xi32>
    %70 = vector.broadcast %5 : vector<16x1xi32> to vector<16x4xi32>
    %71 = arith.cmpi sgt, %69, %70 : vector<16x4xi32>
    %72 = vector.broadcast %41 : vector<1x4xi1> to vector<16x4xi1>
    %73 = arith.andi %72, %71 : vector<16x4xi1>
    %74 = vector.broadcast %43 : vector<1x4xi1> to vector<16x4xi1>
    %75 = arith.andi %73, %74 : vector<16x4xi1>
    %cst_28 = arith.constant 0x7F800000 : f32
    %76 = vector.broadcast %cst_28 : f32 to vector<16x4xf32>
    %77 = arith.select %75, %68, %76 : vector<16x4xi1>, vector<16x4xf32>
    %cst_29 = arith.constant dense<0x7F800000> : vector<16xf32>
    %78 = vector.multi_reduction <minimumf>, %77, %cst_29 [1] : vector<16x4xf32> to vector<16xf32>
    %79 = vector.shape_cast %78 : vector<16xf32> to vector<16x1xf32>
    %cst_30 = arith.constant dense<true> : vector<1x4xi1>
    %80 = arith.xori %43, %cst_30 : vector<1x4xi1>
    %81 = vector.broadcast %80 : vector<1x4xi1> to vector<16x4xi1>
    %82 = arith.andi %73, %81 : vector<16x4xi1>
    %cst_31 = arith.constant 1.000000e+00 : f32
    %cst_32 = arith.constant 0.000000e+00 : f32
    %83 = vector.broadcast %cst_31 : f32 to vector<16x4xf32>
    %84 = vector.broadcast %cst_32 : f32 to vector<16x4xf32>
    %85 = arith.select %82, %83, %84 : vector<16x4xi1>, vector<16x4xf32>
    %cst_33 = arith.constant dense<0.000000e+00> : vector<16xf32>
    %86 = vector.multi_reduction <add>, %85, %cst_33 [1] : vector<16x4xf32> to vector<16xf32>
    %87 = vector.shape_cast %86 : vector<16xf32> to vector<16x1xf32>
    %cst_34 = arith.constant 0.000000e+00 : f32
    %88 = vector.broadcast %cst_34 : f32 to vector<16x1xf32>
    %89 = arith.cmpf ogt, %87, %88 : vector<16x1xf32>
    %90 = vector.broadcast %25 : vector<1x4xi32> to vector<16x4xi32>
    %91 = vector.broadcast %7 : vector<16x1xi32> to vector<16x4xi32>
    %92 = arith.cmpi slt, %90, %91 : vector<16x4xi32>
    %93 = vector.broadcast %41 : vector<1x4xi1> to vector<16x4xi1>
    %94 = arith.andi %93, %92 : vector<16x4xi1>
    %cst_35 = arith.constant 0x7F800000 : f32
    %95 = vector.broadcast %cst_35 : f32 to vector<16x4xf32>
    %96 = arith.select %94, %48, %95 : vector<16x4xi1>, vector<16x4xf32>
    %cst_36 = arith.constant dense<0x7F800000> : vector<16xf32>
    %97 = vector.multi_reduction <minimumf>, %96, %cst_36 [1] : vector<16x4xf32> to vector<16xf32>
    %98 = vector.shape_cast %97 : vector<16xf32> to vector<16x1xf32>
    %cst_37 = arith.constant 0x7F800000 : f32
    %99 = vector.broadcast %cst_37 : f32 to vector<16x1xf32>
    %100 = arith.select %57, %98, %99 : vector<16x1xi1>, vector<16x1xf32>
    %101 = arith.minimumf %79, %100 : vector<16x1xf32>
    %cst_38 = arith.constant dense<true> : vector<16x1xi1>
    %102 = arith.xori %89, %cst_38 : vector<16x1xi1>
    %cst_39 = arith.constant 0x7F800000 : f32
    %103 = vector.broadcast %cst_39 : f32 to vector<16x1xf32>
    %104 = arith.cmpf olt, %101, %103 : vector<16x1xf32>
    %105 = arith.andi %102, %104 : vector<16x1xi1>
    %cst_40 = arith.constant 0.000000e+00 : f32
    %106 = vector.broadcast %cst_40 : f32 to vector<16x1xf32>
    %107 = arith.select %105, %101, %106 : vector<16x1xi1>, vector<16x1xf32>
    %108 = arith.subf %107, %62 : vector<16x1xf32>
    %109 = arith.maximumf %62, %107 : vector<16x1xf32>
    %cst_41 = arith.constant 9.99999974E-5 : f32
    %110 = vector.broadcast %cst_41 : f32 to vector<16x1xf32>
    %111 = arith.maximumf %109, %110 : vector<16x1xf32>
    %112 = arith.divf %108, %111 : vector<16x1xf32>
    %cst_42 = arith.constant 0.000000e+00 : f32
    %113 = vector.broadcast %cst_42 : f32 to vector<16x1xf32>
    %114 = arith.select %105, %112, %113 : vector<16x1xi1>, vector<16x1xf32>
    %115 = vector.shape_cast %114 : vector<16x1xf32> to vector<1x16x1xf32>
    %cst_43 = arith.constant dense<0.000000e+00> : vector<1xf32>
    %116 = vector.multi_reduction <add>, %115, %cst_43 [1, 2] : vector<1x16x1xf32> to vector<1xf32>
    %117 = vector.shape_cast %116 : vector<1xf32> to vector<1x1x1xf32>
    %118 = vector.extract %117[0, 0, 0] : f32 from vector<1x1x1xf32>
    %cst_44 = arith.constant 1.600000e+01 : f32
    %119 = arith.divf %118, %cst_44 : f32
    %cst_45 = arith.constant 1.000000e+00 : f32
    %120 = arith.subf %cst_45, %119 : f32
    %cst_46 = arith.constant 5.000000e-01 : f32
    %121 = arith.mulf %120, %cst_46 : f32
    %122 = vector.broadcast %121 : f32 to vector<1x1xf32>
    %c0_47 = arith.constant 0 : index
    %c0_48 = arith.constant 0 : index
    %c0_49 = arith.constant 0 : index
    %123 = vector.load %arg5[%c0_47, %c0_48, %c0_49] : memref<1x1x1xf32, #tpu.memory_space<vmem>>, vector<1x1x1xf32>
    %124 = vector.shape_cast %123 : vector<1x1x1xf32> to vector<1x1xf32>
    %125 = vector.shape_cast %122 : vector<1x1xf32> to vector<1x1x1xf32>
    tpu.vector_store %arg5[%c0_47, %c0_48, %c0_49], %125 {strides = array<i32>} : memref<1x1x1xf32, #tpu.memory_space<vmem>>, vector<1x1x1xf32>,
    return
  }
  func.func @transform_0(%arg0: i32) -> (i32, i32, i32) {
    %c0_i32 = arith.constant 0 : i32
    %c0_i32_0 = arith.constant 0 : i32
    %c0_i32_1 = arith.constant 0 : i32
    return %arg0, %c0_i32, %c0_i32_0 : i32, i32, i32
  }
  func.func @transform_1(%arg0: i32) -> (i32, i32, i32) {
    %c0_i32 = arith.constant 0 : i32
    %c0_i32_0 = arith.constant 0 : i32
    %c0_i32_1 = arith.constant 0 : i32
    return %arg0, %c0_i32, %c0_i32_0 : i32, i32, i32
  }
  func.func @transform_2(%arg0: i32) -> (i32, i32, i32) {
    %c0_i32 = arith.constant 0 : i32
    %c0_i32_0 = arith.constant 0 : i32
    %c0_i32_1 = arith.constant 0 : i32
    return %arg0, %c0_i32, %c0_i32_0 : i32, i32, i32
  }
  func.func @transform_3(%arg0: i32) -> (i32, i32, i32) {
    %c0_i32 = arith.constant 0 : i32
    %c0_i32_0 = arith.constant 0 : i32
    %c0_i32_1 = arith.constant 0 : i32
    return %arg0, %c0_i32, %c0_i32_0 : i32, i32, i32
  }
  func.func @transform_4(%arg0: i32) -> (i32, i32, i32) {
    %c0_i32 = arith.constant 0 : i32
    %c0_i32_0 = arith.constant 0 : i32
    %c0_i32_1 = arith.constant 0 : i32
    return %arg0, %c0_i32, %c0_i32_0 : i32, i32, i32
  }
}

</mosaic_0001>

<bundles_post_ra>
// kernel: silhouette_distance_fs_batched.1
= control target key start
LH: loop header
LB: loop body
LE: loop exit
PB: predicated region body
PF: predicated region fallthrough
CT: control target
= control target key end

     0   :  { %s1032_s15 = smov 0   ;;  %s1191_s0 = inlined_call_operand.vmem [shape: f32[2,16,32], index: 0, kind: input, shape index: {}]   ;;  %s1192_s1 = inlined_call_operand.vmem [shape: f32[2,16,32], index: 1, kind: input, shape index: {}]   ;;  %s1193_s2 = inlined_call_operand.vmem [shape: s32[2,16,1], index: 2, kind: input, shape index: {}]   ;;  %s1194_s3 = inlined_call_operand.vmem [shape: s32[2,16,1], index: 3, kind: input, shape index: {}]   ;;  %s1195_s4 = inlined_call_operand.vmem [shape: f32[2,1,1], index: 4, kind: output, shape index: {}]  }
   0x1 LB: > { %s897_s16 = sadd.s32 4294967295, %s1000_s15   ;;  %p901_p0 = scmp.ge.s32.totalorder %s1000_s15, 1  ;;  %s1000_s15 = sphi %s1032_s15, %s14_s15  }
   0x2   : > { %p192_p1 = scmp.lt.s32.totalorder %s1000_s15, 3 }
   0x4   : > { %p193_p2 = pnand %p901_p0, %p192_p1 }
   0x5   : > { %p231_p3 = scmp.lt.s32.totalorder (!%p193_p2), %s897_s16, 1 }
   0x6   : > { %196 = sbr.rel (%p193_p2) target bundleno = 1016 (0x3f8), region = 36 }
   0xb   : > { %v1002_v0 = vmov 0   ;;  %s1211_s16 = smov (!%p231_p3, %s897_s16), 1  ;;  %vm262_vm0 = vcmask 261120   ;;  %v398_v17 = vlaneseq  ;;  %v1003_v23 = vmov 0.0  }
   0xc   : > { %976 = vset.pattern.permute.xlu1 %v1002_v0  ;;  %977 = vset.pattern.permute.xlu0 %v1002_v0  ;;  %s925_s17 = sshll.u32 %s1211_s16, 4  ;;  %v1004_v27 = vmov 1.0   ;;  %vm450_vm4 = vcmask 31744   ;;  %vm1005_vm11 = vmmov 1   ;;  %s253_s9 = scalar_lea.vmem %s1195_s4, %s1211_s16 }
   0xd   : > { %s235_s20 = scalar_lea.vmem %s1191_s0, %s925_s17  ;;  %s240_s23 = scalar_lea.vmem %s1192_s1, %s925_s17  ;;  %v425_v20 = vand.u32 127, %v398_v17  ;;  %v399_v0 = vshrl.u32 %v398_v17, 7 }
   0xe   : > { %v254_v1 = vld [vmem:[%s235_s20] sm:$0xff]  ;;  %v255_v2 = vld [vmem:[%s235_s20 + $0x8] sm:$0xff]  ;;  %s250_s26 = scalar_lea.vmem %s1194_s3, %s925_s17  ;;  %s245_s29 = scalar_lea.vmem %s1193_s2, %s925_s17 }
   0xf   : > { %v256_v3 = vld [vmem:[%s240_s23] sm:$0xff]  ;;  %v358_v4 = vmul.f32 %v254_v1, %v254_v1  ;;  %v359_v5 = vmul.f32 %v255_v2, %v255_v2  ;;  %940 = vmatprep.subr.msk.mxu0 %vm262_vm0, %v255_v2  ;;  %v257_v7 = vld [vmem:[%s240_s23 + $0x8] sm:$0xff] }
  0x10   : > { %v350_v6 = vmul.f32 %v256_v3, %v256_v3  ;;  %944 = vmatprep.mubr.msk.f32.mxu0 %vm262_vm0, %v256_v3  ;;  %941 = vmatpush3.xpose.msk.msra.mxu0 %vm262_vm0, %v255_v2  ;;  %v351_v11 = vmul.f32 %v257_v7, %v257_v7  ;;  %v260_v13 = vld [vmem:[%s250_s26] sm:$0xff]  ;;  %v259_v14 = vld [vmem:[%s245_s29 + $0x8] sm:$0xff]  ;;  %v400_v2 = vsub.s32 0, %v399_v0 }
  0x11   : > { %v360_v8 = vsel %vm262_vm0, %v358_v4, 0.0  ;;  %942 = vmatprep.subr.msk.mxu0 %vm262_vm0, %v254_v1  ;;  %v363_v10 = vsel %vm262_vm0, %v359_v5, 0.0  ;;  %v261_v15 = vld [vmem:[%s250_s26 + $0x8] sm:$0xff]  ;;  %v258_v16 = vld [vmem:[%s245_s29] sm:$0xff] }
  0x12   : > { %v352_v9 = vsel %vm262_vm0, %v350_v6, 0.0  ;;  %361 = vadd.xlane.f32.xlu0 %v360_v8  ;;  %v355_v12 = vsel %vm262_vm0, %v351_v11, 0.0 }
  0x13   : > { %353 = vadd.xlane.f32.xlu1 %v352_v9 }
  0x14   : > { %943 = vmatpush3.xpose.msk.msra.mxu0 %vm262_vm0, %v254_v1 }
  0x16   : > { %364 = vadd.xlane.f32.xlu0 %v363_v10 }
  0x17   : > { %945 = vmatmul.mubr.msk.f32.vlgmr.msra.gmra.mxu0 %vm262_vm0, %v257_v7 }
  0x1a   : > { %356 = vadd.xlane.f32.xlu0 %v355_v12 }
  0x24   : > { %439 = vperm.xlu1 %976, %v260_v13  }
  0x28   : > { %430 = vperm.xlu1 %976, %v259_v14  }
  0x30   : > { %442 = vperm.xlu0 %977, %v261_v15  }
  0x34   : > { %427 = vperm.xlu0 %977, %v258_v16  }
  0x9b   : > { %v362_v18 = vpop.xlane.xlu0 %361 }
  0x9c   : > { %v1065_v19 = vpop.xlane.xlu1 %353  ;;  %366 = vxpose.xlu1.b32.start [1/2] (short) (narrow) %v362_v18, 8 }
  0x9f   : > { %v365_v21 = vpop.xlane.xlu0 %364 }
  0xa0   : > { %v440_v22 = vpop.permute.xlu1 %439  ;;  %367 = vxpose.xlu1.b32.end [2/2] (short) (narrow) %v365_v21, 8 }
  0xa1   : > { %vm444_vm1 = vcmp.eq.s32.totalorder %v440_v22, %v425_v20  ;;  %vm757_vm2 = vcmp.lt.s32.totalorder %v425_v20, %v440_v22 }
  0xa2   : > { %v1069_v24 = vsel %vm444_vm1, 1.0, %v1003_v23 }
  0xa3   : > { %583 = vxpose.xlu0.b32.start [1/2] (short) (narrow) %v1069_v24, 8  ;;  %v1072_v26 = vpop.xlane.xlu0 %356  ;;  %v460_v29 = vsel %vm450_vm4, %v1069_v24, 0.0 }
  0xa4   : > { %v431_v25 = vpop.permute.xlu1 %430 }
  0xa5   : > { %vm433_vm3 = vcmp.eq.s32.totalorder %v431_v25, %v425_v20  ;;  %vm725_vm9 = vcmp.gt.s32.totalorder %v425_v20, %v431_v25 }
  0xa6   : > { %947 = vmatprep.subr.msk.mxu1 %vm433_vm3, %v1004_v27  ;;  %v915_v31 = vsel %vm433_vm3, 1.0, %v1003_v23 }
  0xa7   : > { %948 = vmatpush3.msk.msra.mxu1 %vm433_vm3, %v1004_v27  ;;  %v452_v35 = vsel %vm450_vm4, %v915_v31, 0.0 }
  0xab   : > { %v443_v28 = vpop.permute.xlu0 %442 }
  0xac   : > { %vm445_vm5 = vcmp.eq.s32.totalorder %v443_v28, %v425_v20  ;;  %vm758_vm6 = vcmp.lt.s32.totalorder %v425_v20, %v443_v28 }
  0xad   : > { %v1077_v30 = vsel %vm445_vm5, 1.0, %v1003_v23 }
  0xae   : > { %v461_v32 = vsel %vm450_vm4, %v1077_v30, 0.0  ;;  %584 = vxpose.xlu0.b32.end [2/2] (short) (narrow) %v1077_v30, 8 }
  0xaf   : > { %v462_v33 = vadd.f32 %v461_v32, %v460_v29  ;;  %v428_v34 = vpop.permute.xlu0 %427 }
  0xb0   : > { %vm432_vm7 = vcmp.eq.s32.totalorder %v428_v34, %v425_v20  ;;  %vm724_vm14 = vcmp.gt.s32.totalorder %v425_v20, %v428_v34 }
  0xb1   : > { %v463_v36 = vrot.slane %v462_v33, 4  ;;  %v914_v37 = vsel %vm432_vm7, 1.0, %v1003_v23  ;;  %949 = vmatprep.subr.msk.mxu1 %vm432_vm7, %v1004_v27 }
  0xb2   : > { %v451_v38 = vsel %vm450_vm4, %v914_v37, 0.0  ;;  %950 = vmatpush3.msk.msra.mxu1 %vm432_vm7, %v1004_v27  ;;  %vm471_vm7 = vcmask 130048  }
  0xb3   : > { %v464_v39 = vadd.f32 %v463_v36, %v462_v33  ;;  %v453_v40 = vadd.f32 %v452_v35, %v451_v38  ;;  %954 = vmatprep.subr.mxu1 %v1003_v23 }
  0xb5   : > { %v454_v41 = vrot.slane %v453_v40, 4  ;;  %v465_v42 = vrot.slane %v464_v39, 2 }
  0xb7   : > { %v455_v43 = vadd.f32 %v454_v41, %v453_v40  ;;  %v466_v44 = vadd.f32 %v465_v42, %v464_v39 }
  0xb9   : > { %v456_v45 = vrot.slane %v455_v43, 2  ;;  %v467_v46 = vrot.slane %v466_v44, 1 }
  0xbb   : > { %v457_v47 = vadd.f32 %v456_v45, %v455_v43  ;;  %v1087_v48 = vadd.f32 %v467_v46, %v466_v44 }
  0xbd   : > { %v458_v49 = vrot.slane %v457_v47, 1  ;;  %vm470_vm8 = vcmp.gt.f32.partialorder %v1087_v48, 0.0  ;;  %v720_v39 = vmax.f32 %v1087_v48, 1.0 }
  0xbe   : > { %vm1096_vm12 = vmxor %vm470_vm8, %vm1005_vm11 }
  0xbf   : > { %v1090_v50 = vadd.f32 %v458_v49, %v457_v47 }
  0xc1   : > { %vm469_vm10 = vcmp.gt.f32.partialorder %v1090_v50, 0.0  ;;  %v566_v52 = vmul.f32 %v1077_v30, %v1090_v50  ;;  %v565_v60 = vmul.f32 %v1069_v24, %v1090_v50  ;;  %v553_v27 = vmax.f32 %v1090_v50, 1.0 }
  0xc2   : > { %vm729_vm13 = vmand %vm469_vm10, %vm725_vm9 }
  0xc3   : > { %vm746_vm15 = vmand %vm729_vm13, %vm1096_vm12  ;;  %v570_v53 = vsel %vm450_vm4, %v566_v52, 0.0  ;;  %v567_v61 = vsel %vm450_vm4, %v565_v60, 0.0 }
  0xc4   : > { %vm728_vm0 = vmand %vm469_vm10, %vm724_vm14  ;;  %v748_v55 = vsel %vm746_vm15, 1.0, %v1003_v23 }
  0xc5   : > { %vm1106_vm1 = vmand %vm469_vm10, %vm758_vm6  ;;  %v752_v59 = vsel %vm450_vm4, %v748_v55, 0.0 }
  0xc6   : > { %vm1112_vm3 = vmand %vm469_vm10, %vm757_vm2 }
  0xc7   : > { %571 = vadd.xlane.f32.xlu1 %v570_v53  ;;  %vm1118_vm5 = vmand %vm728_vm0, %vm470_vm8 }
  0xc8   : > { %vm1124_vm6 = vmand %vm729_vm13, %vm470_vm8  ;;  %vm1006_vm13 = vmmov 0  }
  0xc9   : > { %vm745_vm2 = vmand %vm728_vm0, %vm1096_vm12 }
  0xca   : > { %v747_v62 = vsel %vm745_vm2, 1.0, %v1003_v23 }
  0xcb   : > { %753 = vadd.xlane.f32.xlu1 %v752_v59  ;;  %v749_v63 = vsel %vm450_vm4, %v747_v62, 0.0 }
  0xd7   : > { %v946_v1 = vpop.f32.mrf.mxu0 }
  0xd8   : > { %v405_v6 = vmul.f32 2.0, %v946_v1 }
  0xd9   : > { %v341_v4 = vpop.f32.mrf.mxu0 }
  0xda   : > { %v404_v9 = vmul.f32 2.0, %v341_v4 }
  0xdb   : > { %568 = vadd.xlane.f32.xlu0 %v567_v61 }
  0xdf   : > { %750 = vadd.xlane.f32.xlu0 %v749_v63 }
 0x118   : > { %v382_v3 = vpop.trf.xlu1 }
 0x119   : > { %v401_v5 = vrot.slane %v382_v3, %v400_v2 }
 0x11b   : > { %v402_v7 = vadd.f32 %v401_v5, %v1065_v19  ;;  %v403_v8 = vadd.f32 %v401_v5, %v1072_v26 }
 0x11d   : > { %v407_v10 = vsub.f32 %v403_v8, %v405_v6  ;;  %v406_v11 = vsub.f32 %v402_v7, %v404_v9 }
 0x11f   : > { %v409_v12 = vmax.f32 %v407_v10, 0.0  ;;  %v408_v13 = vmax.f32 %v406_v11, 0.0 }
 0x121   : > { %978 = vrsqrt.f32 %v409_v12  ;;  %vm419_vm8 = vcmp.eq.f32.partialorder %v409_v12, inf  ;;  %v422_v18 = vand.u32 2147483648, %v409_v12  ;;  %vm412_vm9 = vcmp.eq.f32.partialorder %v408_v13, inf }
 0x122   : > { %980 = vrsqrt.f32 %v408_v13  ;;  %v415_v20 = vand.u32 2147483648, %v408_v13  ;;  %vm421_vm10 = vcmp.eq.f32.partialorder %v409_v12, 0.0  ;;  %vm414_vm12 = vcmp.eq.f32.partialorder %v408_v13, 0.0 }
 0x123   : > { %982 = vrcp.f32 %v553_v27 }
 0x124   : > { %984 = vrcp.f32 %v720_v39 }
 0x126   : > { %v599_v26 = vpop.trf.xlu0 }
 0x12e   : > { %v979_v14 = vpop.eup %978 }
 0x12f   : > { %v981_v15 = vpop.eup %980  ;;  %v418_v16 = vmul.f32 %v979_v14, %v409_v12 }
 0x130   : > { %v411_v17 = vmul.f32 %v981_v15, %v408_v13  ;;  %v983_v28 = vpop.eup %982 }
 0x131   : > { %v420_v21 = vsel %vm419_vm8, %v409_v12, %v418_v16  ;;  %v985_v42 = vpop.eup %984  ;;  %vm812_vm8 = vcmask 0  }
 0x132   : > { %v413_v19 = vsel %vm412_vm9, %v408_v13, %v411_v17  ;;  %v423_v22 = vsel %vm421_vm10, %v422_v18, %v420_v21 }
 0x133   : > { %v416_v25 = vsel %vm414_vm12, %v415_v20, %v413_v19 }
 0x134   : > { %951 = vmatprep.mubr.msk.f32.mxu1 %vm471_vm7, %v416_v25 }
 0x135   : > { %952 = vmatmul.mubr.msk.f32.vlgmr.msra.gmra.mxu1 %vm471_vm7, %v423_v22 }
 0x136   : > { %955 = vmatpush3.msra.mxu1 %v423_v22  ;;  %958 = vmatprep.mubr.msk.f32.mxu1 %vm1006_vm13, %v1003_v23 }
 0x137   : > { %956 = vmatprep.subr.mxu1 %v1003_v23 }
 0x138   : > { %957 = vmatpush3.msra.mxu1 %v416_v25 }
 0x139   : > { %959 = vmatmul.mubr.msk.f32.vlgmr.msra.gmra.mxu1 %vm471_vm7, %v599_v26 }
 0x164   : > { %v569_v40 = vpop.xlane.xlu0 %568 }
 0x165   : > { %v575_v56 = vmax.f32 %v569_v40, 1.0  ;;  %vm573_vm14 = vcmp.gt.f32.partialorder %v569_v40, 0.0 }
 0x167   : > { %986 = vrcp.f32 %v575_v56 }
 0x168   : > { %v751_v41 = vpop.xlane.xlu0 %750 }
 0x169   : > { %vm755_vm15 = vcmp.gt.f32.partialorder %v751_v41, 0.0 }
 0x16a   : > { %vm773_vm0 = vmxor %vm755_vm15, %vm1005_vm11 }
 0x174   : > { %v987_v62 = vpop.eup %986 }
 0x1f5   : > { %v953_v29 = vpop.f32.mrf.mxu1 }
 0x1f6   : > { %v556_v31 = vmul.f32 %v983_v28, %v953_v29  ;;  %v558_v48 = vmul.f32 %v953_v29, %v1077_v30 }
 0x1f7   : > { %v544_v32 = vpop.f32.mrf.mxu1 }
 0x1f8   : > { %v555_v33 = vmul.f32 %v983_v28, %v544_v32  ;;  %v762_v34 = vsel %vm1106_vm1, %v556_v31, inf  ;;  %v557_v46 = vmul.f32 %v1069_v24, %v544_v32  ;;  %v562_v54 = vsel %vm450_vm4, %v558_v48, 0.0  ;;  %v572_v24 = vpop.xlane.xlu1 %571 }
 0x1f9   : > { %v684_v35 = vpop.f32.mrf.mxu1  ;;  %v766_v36 = vsel %vm450_vm4, %v762_v34, inf  ;;  %v576_v57 = vmax.f32 %v572_v24, 1.0  ;;  %vm574_vm1 = vcmp.gt.f32.partialorder %v572_v24, 0.0 }
 0x1fa   : > { %767 = vmin.xlane.f32.xlu1 %v766_v36  ;;  %688 = vxpose.xlu0.b32.start.end [1/1] (short) (narrow) %v684_v35, 16  ;;  %v761_v23 = vsel %vm1112_vm3, %v555_v33, inf  ;;  %v559_v52 = vsel %vm450_vm4, %v557_v46, 0.0 }
 0x1fb   : > { %v960_v37 = vpop.f32.mrf.mxu1  ;;  %v763_v38 = vsel %vm450_vm4, %v761_v23, inf  ;;  %988 = vrcp.f32 %v576_v57 }
 0x1fc   : > { %v754_v55 = vpop.xlane.xlu1 %753 }
 0x1fe   : > { %764 = vmin.xlane.f32.xlu1 %v763_v38 }
 0x208   : > { %v989_v7 = vpop.eup %988 }
 0x276   : > { %v704_v43 = vpop.trf.xlu0 }
 0x277   : > { %v722_v44 = vmul.f32 %v985_v42, %v704_v43 }
 0x279   : > { %v734_v45 = vsel %vm1118_vm5, %v722_v44, inf }
 0x27a   : > { %v705_v47 = vpop.trf.xlu0  ;;  %v736_v49 = vsel %vm450_vm4, %v734_v45, inf }
 0x27b   : > { %v723_v50 = vmul.f32 %v985_v42, %v705_v47  ;;  %737 = vmin.xlane.f32.xlu0 %v736_v49 }
 0x27d   : > { %v735_v51 = vsel %vm1124_vm6, %v723_v50, inf }
 0x27e   : > { %v739_v53 = vsel %vm450_vm4, %v735_v51, inf  ;;  %vm756_vm4 = vcmp.gt.f32.partialorder %v754_v55, 0.0 }
 0x27f   : > { %560 = vadd.xlane.f32.xlu0 %v559_v52  ;;  %740 = vmin.xlane.f32.xlu1 %v739_v53  ;;  %vm774_vm6 = vmxor %vm756_vm4, %vm1005_vm11  ;;  %vm793_vm11 = vcmask 7168  }
 0x283   : > { %563 = vadd.xlane.f32.xlu1 %v562_v54  ;;  %v768_v59 = vpop.xlane.xlu1 %767 }
 0x284   : > { %v770_v63 = vsel %vm574_vm1, %v768_v59, inf }
 0x287   : > { %v765_v58 = vpop.xlane.xlu1 %764 }
 0x288   : > { %v769_v30 = vsel %vm573_vm14, %v765_v58, inf }
 0x304   : > { %v738_v60 = vpop.xlane.xlu0 %737 }
 0x305   : > { %v771_v61 = vmin.f32 %v738_v60, %v769_v30 }
 0x307   : > { %vm775_vm3 = vcmp.lt.f32.partialorder %v771_v61, inf }
 0x308   : > { %vm1165_vm5 = vmand %vm773_vm0, %vm775_vm3  ;;  %v561_v1 = vpop.xlane.xlu0 %560  ;;  %v741_v2 = vpop.xlane.xlu1 %740 }
 0x309   : > { %v578_v3 = vmul.f32 %v987_v62, %v561_v1  ;;  %v772_v4 = vmin.f32 %v741_v2, %v770_v63  ;;  %v779_v5 = vsel %vm1165_vm5, %v771_v61, 0.0 }
 0x30b   : > { %v581_v6 = vsel %vm573_vm14, %v578_v3, 0.0  ;;  %vm776_vm2 = vcmp.lt.f32.partialorder %v772_v4, inf }
 0x30c   : > { %v783_v8 = vmax.f32 %v581_v6, %v779_v5  ;;  %vm1173_vm7 = vmand %vm774_vm6, %vm776_vm2  ;;  %v564_v10 = vpop.xlane.xlu1 %563  ;;  %v781_v17 = vsub.f32 %v779_v5, %v581_v6 }
 0x30d   : > { %v580_v11 = vmul.f32 %v989_v7, %v564_v10  ;;  %v780_v13 = vsel %vm1173_vm7, %v772_v4, 0.0 }
 0x30e   : > { %v785_v12 = vmax.f32 %v783_v8, 0.0001 }
 0x30f   : > { %v582_v14 = vsel %vm574_vm1, %v580_v11, 0.0 }
 0x310   : > { %990 = vrcp.f32 %v785_v12  ;;  %v784_v15 = vmax.f32 %v582_v14, %v780_v13  ;;  %v782_v21 = vsub.f32 %v780_v13, %v582_v14 }
 0x312   : > { %v786_v16 = vmax.f32 %v784_v15, 0.0001 }
 0x314   : > { %992 = vrcp.f32 %v786_v16 }
 0x31d   : > { %v991_v18 = vpop.eup %990 }
 0x31e   : > { %v788_v20 = vmul.f32 %v991_v18, %v781_v17 }
 0x320   : > { %v791_v25 = vsel %vm1165_vm5, %v788_v20, 0.0 }
 0x321   : > { %v993_v19 = vpop.eup %992  ;;  %v794_v27 = vsel %vm793_vm11, %v791_v25, 0.0 }
 0x322   : > { %v790_v22 = vmul.f32 %v993_v19, %v782_v21 }
 0x324   : > { %v792_v26 = vsel %vm1173_vm7, %v790_v22, 0.0 }
 0x325   : > { %v795_v28 = vsel %vm793_vm11, %v792_v26, 0.0 }
 0x326   : > { %v796_v29 = vadd.f32 %v795_v28, %v794_v27 }
 0x328   : > { %797 = vadd.xlane.f32.xlu0 %v796_v29 }
 0x3b1   : > { %v798_v31 = vpop.xlane.xlu0 %797 }
 0x3b2   : > { %v799_v32 = vrot.slane %v798_v31, 4 }
 0x3b4   : > { %v800_v33 = vadd.f32 %v799_v32, %v798_v31 }
 0x3b6   : > { %v801_v34 = vrot.slane %v800_v33, 2 }
 0x3b8   : > { %v802_v35 = vadd.f32 %v801_v34, %v800_v33 }
 0x3ba   : > { %v803_v36 = vrot.slane %v802_v35, 1 }
 0x3bc   : > { %v804_v23 = vadd.f32 %v803_v36, %v802_v35 }
 0x3be   : > { %961 = vpush %v804_v23 }
 0x3ef   : > { %s962_s30 = spop %961 }
 0x3f0   : > { %s808_s5 = smul.f32 0.0625, %s962_s30 }
 0x3f2   : > { %s809_s6 = ssub.f32 1.0, %s808_s5 }
 0x3f4   : > { %s810_s10 = smul.f32 0.5, %s809_s6 }
 0x3f6   : > { %v811_v37 = vstv %s810_s10 }
 0x3f7   : > { %813 = vst.msk [vmem:[%s253_s9] sm:$0x1] %vm812_vm8, %v811_v37 }
 0x3f8 PF: > { %s14_s15 = sadd.s32 1, %s1000_s15  }
 0x3f9   : > { %p11_p4 = scmp.ge.s32.totalorder %s14_s15, 4  }
 0x3fb   :  { %13 = sbr.rel (!%p11_p4) target bundleno = 1 (0x1), region = 75 }

</bundles_post_ra>
